<compile_context>
chip_gen: v5e
topology: v5e:2x2
jax: 0.10.0
libtpu: 0.0.40
codegen_flags: <defaults>
</compile_context>

<pallas_src>
import jax
import jax.numpy as jnp
import numpy as np
from jax.experimental import pallas as pl
from jax.experimental.pallas import tpu as pltpu


def _silu(x):
    return x * jax.nn.sigmoid(x)


def _round_up(v, m):
    return ((v + m - 1) // m) * m


def _vmem_capacity_bytes(default=64 * 1024 * 1024):
    try:
        return int(pltpu.get_tpu_info().vmem_capacity_bytes)
    except Exception:
        return default


def _pick_f_chunk(F, D, budget_bytes):
    """Chunk an expert hidden dim so 3 double-buffered bf16 weight blocks fit."""
    if F <= 128:
        return F
    max_fc = max(128, budget_bytes // (12 * max(D, 1)))
    fc = max(128, (min(F, max_fc) // 128) * 128)
    while fc > 128 and F % fc != 0:
        fc -= 128
    if F % fc != 0:
        return F  # irregular F: full dim is always a legal block
    return fc


def _pick_rows(rows_target, D, budget_bytes, cap=512):
    """Row-tile sized for MXU utilization, bounded by the activation VMEM budget."""
    vmem_rows = (budget_bytes // (12 * max(D, 1)) // 8) * 8
    t = min(cap, _round_up(max(rows_target, 1), 8))
    if vmem_rows >= 8:
        t = min(t, vmem_rows)
    return max(t, 8)


# ----------------------- routed experts: grouped matmul ---------------------- #

def _grouped_expert_kernel(tile_expert_ref, tile_block_ref,   # SMEM (scalar prefetch)
                           x_ref, w_ref,                      # (TM, D) bf16, (TM, 1) f32
                           wg_ref, wu_ref, wd_ref,            # (1,D,FC), (1,D,FC), (1,FC,D)
                           o_ref,                             # (TM, D) bf16
                           acc_ref):                          # VMEM (TM, D) f32
    t = pl.program_id(0)
    fc = pl.program_id(1)
    is_active = tile_block_ref[t] == t   # suffix padding tiles: no compute, no new DMA

    @pl.when(fc == 0)
    def _():
        acc_ref[...] = jnp.zeros_like(acc_ref)

    @pl.when(is_active)
    def _():
        x = x_ref[...]
        g = jnp.dot(x, wg_ref[0], preferred_element_type=jnp.float32)
        u = jnp.dot(x, wu_ref[0], preferred_element_type=jnp.float32)
        h = (_silu(g) * u).astype(x.dtype)
        out = jnp.dot(h, wd_ref[0], preferred_element_type=jnp.float32)
        acc_ref[...] += out * w_ref[...]   # per-row routing weight, scale after matmul

    @pl.when(fc == pl.num_programs(1) - 1)
    def _():
        o_ref[...] = acc_ref[...].astype(o_ref.dtype)


# ------------------------------- shared expert ------------------------------- #

def _shared_expert_kernel(x_ref, wg_ref, wu_ref, wd_ref, o_ref, acc_ref):
    fc = pl.program_id(1)

    @pl.when(fc == 0)
    def _():
        acc_ref[...] = jnp.zeros_like(acc_ref)

    x = x_ref[...]
    g = jnp.dot(x, wg_ref[...], preferred_element_type=jnp.float32)
    u = jnp.dot(x, wu_ref[...], preferred_element_type=jnp.float32)
    h = (_silu(g) * u).astype(x.dtype)
    acc_ref[...] += jnp.dot(h, wd_ref[...], preferred_element_type=jnp.float32)

    @pl.when(fc == pl.num_programs(1) - 1)
    def _():
        o_ref[...] = acc_ref[...].astype(o_ref.dtype)


# ---------------------------------- wrapper ---------------------------------- #

def moe_forward(x, params, top_k, compute_dtype=jnp.bfloat16):
    B, T, D = x.shape
    N = B * T
    x_flat = x.reshape(N, D)

    E, _, F = params["Wg"].shape
    DS = params["ws_gate"].shape[1]
    M = N * top_k

    # -------- VMEM-aware tile sizing (v7x: 64 MiB, v5e/v6e: 128 MiB) --------
    vmem_cap = _vmem_capacity_bytes()
    vmem_limit = int(min(vmem_cap * 0.85, 100 * 1024 * 1024))
    w_budget = int(vmem_limit * 0.45)
    a_budget = int(vmem_limit * 0.25)

    tile_m = _pick_rows(M // max(E, 1), D, a_budget)
    f_chunk = _pick_f_chunk(F, D, w_budget)
    nf = F // f_chunk
    num_tiles = (M + tile_m - 1) // tile_m + E   # static upper bound on group tiles
    M_pad = num_tiles * tile_m

    # ---------------- gating / routing bookkeeping (plain XLA) ----------------
    # TODO(synk): torch's dynamic per-expert loop with counts.cumsum().cpu() and
    # scatter_add_ has no Pallas equivalent; replaced by static-capacity,
    # tile-aligned expert grouping + an XLA scatter-add un-permute.
    xf32 = x_flat.astype(jnp.float32)
    logits = xf32 @ params["w_g"].astype(jnp.float32)
    probs = jax.nn.softmax(logits, axis=-1)
    # NOTE: top-k weights are used un-renormalized, matching the torch module.
    topk_vals, topk_ids = jax.lax.top_k(probs, top_k)

    flat_e = topk_ids.reshape(-1).astype(jnp.int32)                 # (M,)
    flat_w = topk_vals.reshape(-1).astype(jnp.float32)              # (M,)
    flat_tok = jnp.repeat(jnp.arange(N, dtype=jnp.int32), top_k)    # (M,)

    order = jnp.argsort(flat_e)
    e_sorted = flat_e[order]
    tok_sorted = flat_tok[order]
    w_sorted = flat_w[order]

    counts = jnp.bincount(flat_e, length=E).astype(jnp.int32)       # (E,)
    padded_counts = ((counts + tile_m - 1) // tile_m) * tile_m      # 0 for empty experts
    padded_end = jnp.cumsum(padded_counts).astype(jnp.int32)
    padded_start = padded_end - padded_counts
    group_start = (jnp.cumsum(counts) - counts).astype(jnp.int32)

    # destination row in the expert-grouped, tile-aligned activation buffer
    ranks = jnp.arange(M, dtype=jnp.int32) - group_start[e_sorted]
    dst = padded_start[e_sorted] + ranks                            # (M,) unique

    total_rows = padded_end[-1]
    num_active_tiles = total_rows // tile_m

    tile_idx = jnp.arange(num_tiles, dtype=jnp.int32)
    tile_row = jnp.minimum(tile_idx * tile_m, jnp.maximum(total_rows - tile_m, 0))
    tile_expert = jnp.minimum(
        jnp.searchsorted(padded_end, tile_row, side="right"), E - 1).astype(jnp.int32)
    tile_block = jnp.minimum(
        tile_idx, jnp.maximum(num_active_tiles - 1, 0)).astype(jnp.int32)

    # expert-grouped activations / per-row routing weights (padding rows are zero)
    src_tok = jnp.full((M_pad,), N, jnp.int32).at[dst].set(tok_sorted)
    x_ext = jnp.concatenate(
        [x_flat.astype(compute_dtype), jnp.zeros((1, D), compute_dtype)], axis=0)
    xs_pad = x_ext[src_tok]                                         # (M_pad, D) bf16
    w_pad = jnp.zeros((M_pad, 1), jnp.float32).at[dst, 0].set(w_sorted)

    Wg = params["Wg"].astype(compute_dtype)
    Wu = params["Wu"].astype(compute_dtype)
    Wd = params["Wd"].astype(compute_dtype)

    routed_sorted = pl.pallas_call(
        _grouped_expert_kernel,
        out_shape=jax.ShapeDtypeStruct((M_pad, D), compute_dtype),
        grid_spec=pltpu.PrefetchScalarGridSpec(
            num_scalar_prefetch=2,
            grid=(num_tiles, nf),
            in_specs=[
                pl.BlockSpec((tile_m, D), lambda t, f, te, tb: (tb[t], 0)),        # x
                pl.BlockSpec((tile_m, 1), lambda t, f, te, tb: (tb[t], 0)),        # weights
                pl.BlockSpec((1, D, f_chunk), lambda t, f, te, tb: (te[t], 0, f)),  # Wg
                pl.BlockSpec((1, D, f_chunk), lambda t, f, te, tb: (te[t], 0, f)),  # Wu
                pl.BlockSpec((1, f_chunk, D), lambda t, f, te, tb: (te[t], f, 0)),  # Wd
            ],
            out_specs=pl.BlockSpec((tile_m, D), lambda t, f, te, tb: (t, 0)),
            scratch_shapes=[pltpu.VMEM((tile_m, D), jnp.float32)],
        ),
        compiler_params=pltpu.CompilerParams(
            dimension_semantics=("parallel", "arbitrary"),
            vmem_limit_bytes=vmem_limit),
    )(tile_expert, tile_block, xs_pad, w_pad, Wg, Wu, Wd)

    # Un-permute: scatter weighted expert outputs back to token rows (f32 accumulate).
    # Padding rows target a dummy row N that is sliced off.
    routed = jnp.zeros((N + 1, D), jnp.float32).at[src_tok].add(
        routed_sorted.astype(jnp.float32))[:N]

    # ------------------------------ shared expert -----------------------------
    ds_chunk = _pick_f_chunk(DS, D, w_budget)
    nds = DS // ds_chunk
    tile_n = _pick_rows(N, D, a_budget)
    N_pad = _round_up(N, tile_n)
    x_s = jnp.zeros((N_pad, D), compute_dtype).at[:N].set(x_flat.astype(compute_dtype))

    shared_out = pl.pallas_call(
        _shared_expert_kernel,
        out_shape=jax.ShapeDtypeStruct((N_pad, D), compute_dtype),
        grid_spec=pltpu.PrefetchScalarGridSpec(
            num_scalar_prefetch=0,
            grid=(N_pad // tile_n, nds),
            in_specs=[
                pl.BlockSpec((tile_n, D), lambda i, f: (i, 0)),
                pl.BlockSpec((D, ds_chunk), lambda i, f: (0, f)),
                pl.BlockSpec((D, ds_chunk), lambda i, f: (0, f)),
                pl.BlockSpec((ds_chunk, D), lambda i, f: (f, 0)),
            ],
            out_specs=pl.BlockSpec((tile_n, D), lambda i, f: (i, 0)),
            scratch_shapes=[pltpu.VMEM((tile_n, D), jnp.float32)],
        ),
        compiler_params=pltpu.CompilerParams(
            dimension_semantics=("parallel", "arbitrary"),
            vmem_limit_bytes=vmem_limit),
    )(x_s,
      params["ws_gate"].astype(compute_dtype),
      params["ws_up"].astype(compute_dtype),
      params["ws_down"].astype(compute_dtype))[:N]

    out = (shared_out.astype(jnp.float32) + routed).astype(x.dtype)
    return out.reshape(B, T, D)


# ----------------------------- pure-JAX reference ---------------------------- #

def _expert_ref(x, wg, wu, wd):
    return (jax.nn.silu(x @ wg) * (x @ wu)) @ wd


def moe_reference(x, params, top_k):
    B, T, D = x.shape
    xf = x.reshape(-1, D)
    shared = _expert_ref(xf, params["ws_gate"], params["ws_up"], params["ws_down"])
    probs = jax.nn.softmax(xf @ params["w_g"], axis=-1)
    vals, ids = jax.lax.top_k(probs, top_k)
    N, E = probs.shape
    w_dense = jnp.zeros((N, E)).at[jnp.arange(N)[:, None], ids].set(vals)
    out = shared
    for e in range(E):
        out = out + w_dense[:, e:e + 1] * _expert_ref(
            xf, params["Wg"][e], params["Wu"][e], params["Wd"][e])
    return out.reshape(B, T, D)


# ----------------------------------- main ------------------------------------ #

if __name__ == "__main__":
    # small config consistent with the module's __init__
    B, T = 2, 8
    d_hidden = 32
    d_expert = 64
    n_routed_experts = 8
    n_experts_per_token = 2
    n_shared_experts = 2
    d_shared = d_expert * n_shared_experts

    key = jax.random.PRNGKey(0)
    keys = jax.random.split(key, 9)
    std = 0.05
    params = {
        # routed experts stacked on a leading expert axis
        "Wg": std * jax.random.normal(keys[0], (n_routed_experts, d_hidden, d_expert), jnp.float32),
        "Wu": std * jax.random.normal(keys[1], (n_routed_experts, d_hidden, d_expert), jnp.float32),
        "Wd": std * jax.random.normal(keys[2], (n_routed_experts, d_expert, d_hidden), jnp.float32),
        # shared expert (d_expert * n_shared_experts wide)
        "ws_gate": std * jax.random.normal(keys[3], (d_hidden, d_shared), jnp.float32),
        "ws_up":   std * jax.random.normal(keys[4], (d_hidden, d_shared), jnp.float32),
        "ws_down": std * jax.random.normal(keys[5], (d_shared, d_hidden), jnp.float32),
        # gate
        "w_g": std * jax.random.normal(keys[6], (d_hidden, n_routed_experts), jnp.float32),
    }
    x = jax.random.normal(keys[7], (B, T, d_hidden), jnp.float32)

    out = jax.block_until_ready(moe_forward(x, params, n_experts_per_token))
    ref = jax.block_until_ready(moe_reference(x, params, n_experts_per_token))

    # bf16 compute path vs f32 reference -> relative tolerance a few %.
    np.testing.assert_allclose(np.asarray(out), np.asarray(ref), rtol=3e-2, atol=3e-3)

    print("KERNEL_OK")
</pallas_src>

<mosaic_0001>
module attributes {stable_mosaic.version = 11 : i64} {
  func.func @_grouped_expert_kernel(%arg0: i32, %arg1: i32, %arg2: memref<12xi32, #tpu.memory_space<smem>>, %arg3: memref<12xi32, #tpu.memory_space<smem>>, %arg4: memref<8x32xbf16, #tpu.memory_space<vmem>>, %arg5: memref<8x1xf32, #tpu.memory_space<vmem>>, %arg6: memref<1x32x64xbf16, #tpu.memory_space<vmem>>, %arg7: memref<1x32x64xbf16, #tpu.memory_space<vmem>>, %arg8: memref<1x64x32xbf16, #tpu.memory_space<vmem>>, %arg9: memref<8x32xbf16, #tpu.memory_space<vmem>>, %arg10: memref<8x32xf32, #tpu.memory_space<vmem>>) attributes {dimension_semantics = [#tpu.dimension_semantics<parallel>, #tpu.dimension_semantics<arbitrary>], iteration_bounds = array<i64: 12, 1>, scalar_prefetch = 2 : i64, scratch_operands = 1 : i64, tpu.core_type = #tpu.core_type<tc>, window_params = [{transform_indices = @transform_0, window_bounds = array<i64: 8, 32>}, {transform_indices = @transform_1, window_bounds = array<i64: 8, 1>}, {transform_indices = @transform_2, window_bounds = array<i64: 1, 32, 64>}, {transform_indices = @transform_3, window_bounds = array<i64: 1, 32, 64>}, {transform_indices = @transform_4, window_bounds = array<i64: 1, 64, 32>}, {transform_indices = @transform_5, window_bounds = array<i64: 8, 32>}]} {
    %0 = arith.index_cast %arg0 : i32 to index
    %1 = memref.load %arg3[%0] : memref<12xi32, #tpu.memory_space<smem>>
    %2 = arith.cmpi eq, %1, %arg0 : i32
    %c0_i32 = arith.constant 0 : i32
    %3 = arith.cmpi eq, %arg1, %c0_i32 : i32
    %4 = arith.extui %3 : i1 to i32
    %c0_i32_0 = arith.constant 0 : i32
    %5 = arith.cmpi ne, %4, %c0_i32_0 : i32
    scf.if %5 {
      %cst = arith.constant 0.000000e+00 : f32
      %11 = vector.broadcast %cst : f32 to vector<8x32xf32>
      %c0 = arith.constant 0 : index
      %c0_4 = arith.constant 0 : index
      %12 = vector.load %arg10[%c0, %c0_4] : memref<8x32xf32, #tpu.memory_space<vmem>>, vector<8x32xf32>
      tpu.vector_store %arg10[%c0, %c0_4], %11 {strides = array<i32>} : memref<8x32xf32, #tpu.memory_space<vmem>>, vector<8x32xf32>,
    } else {
    }
    %6 = arith.extui %2 : i1 to i32
    %c0_i32_1 = arith.constant 0 : i32
    %7 = arith.cmpi ne, %6, %c0_i32_1 : i32
    scf.if %7 {
      %c0 = arith.constant 0 : index
      %c0_4 = arith.constant 0 : index
      %11 = vector.load %arg4[%c0, %c0_4] : memref<8x32xbf16, #tpu.memory_space<vmem>>, vector<8x32xbf16>
      %c0_5 = arith.constant 0 : index
      %c0_6 = arith.constant 0 : index
      %c0_7 = arith.constant 0 : index
      %12 = vector.load %arg6[%c0_5, %c0_6, %c0_7] : memref<1x32x64xbf16, #tpu.memory_space<vmem>>, vector<1x32x64xbf16>
      %13 = vector.shape_cast %12 : vector<1x32x64xbf16> to vector<32x64xbf16>
      %cst = arith.constant dense<0.000000e+00> : vector<8x64xf32>
      %14 = tpu.matmul %11, %13, %cst {dimension_numbers = #tpu.dot_dimension_numbers<[1], [0], [0], [1], [0, 0, 1, 1], [], []>} : vector<8x32xbf16>, vector<32x64xbf16>, vector<8x64xf32> -> vector<8x64xf32>
      %c0_8 = arith.constant 0 : index
      %c0_9 = arith.constant 0 : index
      %c0_10 = arith.constant 0 : index
      %15 = vector.load %arg7[%c0_8, %c0_9, %c0_10] : memref<1x32x64xbf16, #tpu.memory_space<vmem>>, vector<1x32x64xbf16>
      %16 = vector.shape_cast %15 : vector<1x32x64xbf16> to vector<32x64xbf16>
      %cst_11 = arith.constant dense<0.000000e+00> : vector<8x64xf32>
      %17 = tpu.matmul %11, %16, %cst_11 {dimension_numbers = #tpu.dot_dimension_numbers<[1], [0], [0], [1], [0, 0, 1, 1], [], []>} : vector<8x32xbf16>, vector<32x64xbf16>, vector<8x64xf32> -> vector<8x64xf32>
      %18 = arith.negf %14 : vector<8x64xf32>
      %19 = math.exp %18 : vector<8x64xf32>
      %cst_12 = arith.constant 1.000000e+00 : f32
      %20 = vector.broadcast %cst_12 : f32 to vector<8x64xf32>
      %21 = arith.addf %20, %19 : vector<8x64xf32>
      %22 = arith.divf %20, %21 : vector<8x64xf32>
      %23 = arith.mulf %14, %22 : vector<8x64xf32>
      %24 = arith.mulf %23, %17 : vector<8x64xf32>
      %25 = arith.truncf %24 : vector<8x64xf32> to vector<8x64xbf16>
      %c0_13 = arith.constant 0 : index
      %c0_14 = arith.constant 0 : index
      %c0_15 = arith.constant 0 : index
      %26 = vector.load %arg8[%c0_13, %c0_14, %c0_15] : memref<1x64x32xbf16, #tpu.memory_space<vmem>>, vector<1x64x32xbf16>
      %27 = vector.shape_cast %26 : vector<1x64x32xbf16> to vector<64x32xbf16>
      %cst_16 = arith.constant dense<0.000000e+00> : vector<8x32xf32>
      %28 = tpu.matmul %25, %27, %cst_16 {dimension_numbers = #tpu.dot_dimension_numbers<[1], [0], [0], [1], [0, 0, 1, 1], [], []>} : vector<8x64xbf16>, vector<64x32xbf16>, vector<8x32xf32> -> vector<8x32xf32>
      %c0_17 = arith.constant 0 : index
      %c0_18 = arith.constant 0 : index
      %29 = vector.load %arg10[%c0_17, %c0_18] : memref<8x32xf32, #tpu.memory_space<vmem>>, vector<8x32xf32>
      %c0_19 = arith.constant 0 : index
      %c0_20 = arith.constant 0 : index
      %30 = vector.load %arg5[%c0_19, %c0_20] : memref<8x1xf32, #tpu.memory_space<vmem>>, vector<8x1xf32>
      %31 = vector.broadcast %30 : vector<8x1xf32> to vector<8x32xf32>
      %32 = arith.mulf %28, %31 : vector<8x32xf32>
      %33 = arith.addf %29, %32 : vector<8x32xf32>
      %c0_21 = arith.constant 0 : index
      %c0_22 = arith.constant 0 : index
      %34 = vector.load %arg10[%c0_21, %c0_22] : memref<8x32xf32, #tpu.memory_space<vmem>>, vector<8x32xf32>
      tpu.vector_store %arg10[%c0_21, %c0_22], %33 {strides = array<i32>} : memref<8x32xf32, #tpu.memory_space<vmem>>, vector<8x32xf32>,
    } else {
    }
    %c0_i32_2 = arith.constant 0 : i32
    %8 = arith.cmpi eq, %arg1, %c0_i32_2 : i32
    %9 = arith.extui %8 : i1 to i32
    %c0_i32_3 = arith.constant 0 : i32
    %10 = arith.cmpi ne, %9, %c0_i32_3 : i32
    scf.if %10 {
      %c0 = arith.constant 0 : index
      %c0_4 = arith.constant 0 : index
      %11 = vector.load %arg10[%c0, %c0_4] : memref<8x32xf32, #tpu.memory_space<vmem>>, vector<8x32xf32>
      %12 = arith.truncf %11 : vector<8x32xf32> to vector<8x32xbf16>
      %c0_5 = arith.constant 0 : index
      %c0_6 = arith.constant 0 : index
      %13 = vector.load %arg9[%c0_5, %c0_6] : memref<8x32xbf16, #tpu.memory_space<vmem>>, vector<8x32xbf16>
      tpu.vector_store %arg9[%c0_5, %c0_6], %12 {strides = array<i32>} : memref<8x32xbf16, #tpu.memory_space<vmem>>, vector<8x32xbf16>,
    } else {
    }
    return
  }
  func.func @transform_0(%arg0: i32, %arg1: i32, %arg2: memref<12xi32, #tpu.memory_space<smem>>, %arg3: memref<12xi32, #tpu.memory_space<smem>>) -> (i32, i32) {
    %0 = arith.index_cast %arg0 : i32 to index
    %1 = memref.load %arg3[%0] : memref<12xi32, #tpu.memory_space<smem>>
    %c0_i32 = arith.constant 0 : i32
    %c0_i32_0 = arith.constant 0 : i32
    return %1, %c0_i32 : i32, i32
  }
  func.func @transform_1(%arg0: i32, %arg1: i32, %arg2: memref<12xi32, #tpu.memory_space<smem>>, %arg3: memref<12xi32, #tpu.memory_space<smem>>) -> (i32, i32) {
    %0 = arith.index_cast %arg0 : i32 to index
    %1 = memref.load %arg3[%0] : memref<12xi32, #tpu.memory_space<smem>>
    %c0_i32 = arith.constant 0 : i32
    %c0_i32_0 = arith.constant 0 : i32
    return %1, %c0_i32 : i32, i32
  }
  func.func @transform_2(%arg0: i32, %arg1: i32, %arg2: memref<12xi32, #tpu.memory_space<smem>>, %arg3: memref<12xi32, #tpu.memory_space<smem>>) -> (i32, i32, i32) {
    %0 = arith.index_cast %arg0 : i32 to index
    %1 = memref.load %arg2[%0] : memref<12xi32, #tpu.memory_space<smem>>
    %c0_i32 = arith.constant 0 : i32
    %c0_i32_0 = arith.constant 0 : i32
    return %1, %c0_i32, %arg1 : i32, i32, i32
  }
  func.func @transform_3(%arg0: i32, %arg1: i32, %arg2: memref<12xi32, #tpu.memory_space<smem>>, %arg3: memref<12xi32, #tpu.memory_space<smem>>) -> (i32, i32, i32) {
    %0 = arith.index_cast %arg0 : i32 to index
    %1 = memref.load %arg2[%0] : memref<12xi32, #tpu.memory_space<smem>>
    %c0_i32 = arith.constant 0 : i32
    %c0_i32_0 = arith.constant 0 : i32
    return %1, %c0_i32, %arg1 : i32, i32, i32
  }
  func.func @transform_4(%arg0: i32, %arg1: i32, %arg2: memref<12xi32, #tpu.memory_space<smem>>, %arg3: memref<12xi32, #tpu.memory_space<smem>>) -> (i32, i32, i32) {
    %0 = arith.index_cast %arg0 : i32 to index
    %1 = memref.load %arg2[%0] : memref<12xi32, #tpu.memory_space<smem>>
    %c0_i32 = arith.constant 0 : i32
    %c0_i32_0 = arith.constant 0 : i32
    return %1, %arg1, %c0_i32 : i32, i32, i32
  }
  func.func @transform_5(%arg0: i32, %arg1: i32, %arg2: memref<12xi32, #tpu.memory_space<smem>>, %arg3: memref<12xi32, #tpu.memory_space<smem>>) -> (i32, i32) {
    %c0_i32 = arith.constant 0 : i32
    %c0_i32_0 = arith.constant 0 : i32
    return %arg0, %c0_i32 : i32, i32
  }
}

</mosaic_0001>

<bundles_post_ra>
// kernel: tpu_custom_call.1
= control target key start
LH: loop header
LB: loop body
LE: loop exit
PB: predicated region body
PF: predicated region fallthrough
CT: control target
= control target key end

     0   :  { %s834_s30 = smov [#allocation4]   ;;  %s835_s8 = smov [#allocation5]   ;;  %s950_s0 = inlined_call_operand.vmem [shape: s32[12], index: 0, kind: input, shape index: {}]   ;;  %s951_s2 = inlined_call_operand.vmem [shape: bf16[96,32], index: 2, kind: input, shape index: {}]   ;;  %s952_s3 = inlined_call_operand.vmem [shape: f32[96,1], index: 3, kind: input, shape index: {}]   ;;  %s953_s4 = inlined_call_operand.vmem [shape: bf16[8,32,64], index: 4, kind: input, shape index: {}]   ;;  %s954_s5 = inlined_call_operand.vmem [shape: bf16[8,32,64], index: 5, kind: input, shape index: {}]   ;;  %s955_s6 = inlined_call_operand.vmem [shape: bf16[8,64,32], index: 6, kind: input, shape index: {}]   ;;  %s956_s7 = inlined_call_operand.vmem [shape: bf16[96,32], index: 7, kind: output, shape index: {}]   ;;  %s957_s1 = inlined_call_operand.vmem [shape: s32[12], index: 1, kind: input, shape index: {}]  }
   0x1   :  { %s13_s26 = sshll.u32 %s950_s0, 4  ;;  %s18_s29 = sshll.u32 %s957_s1, 4  ;;  %s14_s26 = int_to_ptr.vmem [resolvable:$true] %s13_s26  ;;  %s19_s29 = int_to_ptr.vmem [resolvable:$true] %s18_s29 }
   0x2   :  { %16 = dma.vmem_to_smem %s14_s26, 16, %s834_s30, [#allocation3] }
   0x3   :  { %21 = dma.vmem_to_smem %s19_s29, 16, %s835_s8, [#allocation3] }
   0x4   :  { %820 = dma.done.wait [#allocation3], 32 }
   0x5   :  { %821 = vsyncadd [#allocation3], 4294967264 }
   0x6   :  { %24 = sfence }
   0x7   :  { %s884_s9 = smov 0   ;;  %s886_s10 = smov 0  }
   0x8   :  { %s888_s11 = smov 0  }
   0x9 LB: > { %s42_s0 = sadd.s32 1, %s828_s10  ;;  %p691_p0 = scmp.ge.s32.totalorder %s832_s11, 1  ;;  %s832_s11 = sphi %s888_s11, %s30_s11   ;;  %s828_s10 = sphi %s886_s10, %s959_s10   ;;  %s824_s9 = sphi %s884_s9, %s958_s9  }
   0xa   : > { %p44_p1 = scmp.ge.s32.totalorder %s42_s0, 12  ;;  %p289_p2 = scmp.lt.s32.totalorder %s832_s11, 13 }
   0xc   : > { %s961_s0 = smov (%p44_p1, %s42_s0), 0  ;;  %p290_p3 = pnand %p691_p0, %p289_p2 }
   0xd   : > { %s349_s1 = sld [smem:[#allocation5 + %s824_s9]] (!%p290_p3)  ;;  %p393_p4 = scmp.lt.s32.totalorder (!%p290_p3), %s824_s9, 11 }
   0xe   : > { %293 = sbr.rel (%p290_p3) target bundleno = 352 (0x160), region = 40  ;;  %s355_s12 = sld [smem:[#allocation5 + %s824_s9]] (!%p290_p3) }
   0xf   : > { %s361_s13 = sld [smem:[#allocation4 + %s824_s9]] (!%p290_p3) }
  0x10   : > { %s371_s14 = sld [smem:[#allocation4 + %s824_s9]] (!%p290_p3) }
  0x11   : > { %s381_s15 = sld [smem:[#allocation4 + %s824_s9]] (!%p290_p3) }
  0x12   : > { %s398_s17 = sld [smem:[#allocation5 + %s824_s9]] (!%p290_p3) }
  0x13   : > { %vm404_vm0 = vcmask 261120   ;;  %v836_v0 = vmov 0.0   ;;  %s394_s16 = scalar_select %p393_p4, %s824_s9, 11 }
  0x14   : > { %405 = vst.msk [vmem:[#allocation2] sm:$0xff] %vm404_vm0, %v836_v0  ;;  %p350_p5 = scmp.lt.s32.totalorder %s349_s1, 11  ;;  %p356_p6 = scmp.lt.s32.totalorder %s355_s12, 11 }
  0x15   : > { %s700_s18 = sshll.u32 %s394_s16, 2  ;;  %p362_p7 = scmp.lt.s32.totalorder %s361_s13, 7 }
  0x16   : > { %s963_s1 = smov (!%p350_p5, %s349_s1), 11  ;;  %s965_s12 = smov (!%p356_p6, %s355_s12), 11 }
  0x17   : > { %s692_s19 = sshll.u32 %s963_s1, 2  ;;  %s693_s23 = sshll.u32 %s965_s12, 3 }
  0x18   : > { %s353_s22 = scalar_lea.vmem %s951_s2, %s692_s19  ;;  %s919_s26 = scalar_lea.vmem %s952_s3, %s693_s23 }
  0x19   : > { %p372_p8 = scmp.lt.s32.totalorder %s371_s14, 7  ;;  %s967_s13 = smov (!%p362_p7, %s361_s13), 7 }
  0x1a   : > { %s740_s27 = sshll.u32 %s967_s13, 4  ;;  %p383_p9 = scmp.lt.s32.totalorder %s381_s15, 7 }
  0x1b   : > { %s969_s14 = smov (!%p372_p8, %s371_s14), 7  ;;  %s369_s30 = scalar_lea.vmem %s953_s4, %s740_s27 }
  0x1c   : > { %s741_s8 = sshll.u32 %s969_s14, 4  ;;  %s930_s21 = scalar_lea.vmem %s956_s7, %s700_s18 }
  0x1d   : > { %s379_s19 = scalar_lea.vmem %s954_s5, %s741_s8  ;;  %s971_s15 = smov (!%p383_p9, %s381_s15), 7 }
  0x1e   : > { %s742_s23 = sshll.u32 %s971_s15, 5  ;;  %p701_p10 = scmp.ne.s32.totalorder %s398_s17, %s824_s9 }
  0x1f   : > { %s390_s13 = scalar_lea.vmem %s955_s6, %s742_s23 }
  0x20   : > { %408 = sbr.rel (%p701_p10) target bundleno = 345 (0x159), region = 48 }
  0x25   : > { %v744_v1 = vld [vmem:[%s369_s30 + $0x8] sm:$0xff]  ;;  %v743_v3 = vld [vmem:[%s369_s30] sm:$0xff]  ;;  %v750_v6 = vld [vmem:[%s390_s13 + $0x18] sm:$0xff]  ;;  %v837_v14 = vmov 0   ;;  %vm526_vm5 = vcmask 523264  }
  0x26   : > { %v746_v2 = vld [vmem:[%s379_s19 + $0x8] sm:$0xff]  ;;  %436 = vmatpush.bf16.msra.mxu0 %v744_v1  ;;  %v745_v4 = vld [vmem:[%s379_s19] sm:$0xff]  ;;  %534 = vmatpush.bf16.msra.mxu2 %v750_v6  ;;  %v749_v7 = vld [vmem:[%s390_s13 + $0x10] sm:$0xff] }
  0x27   : > { %465 = vmatpush.bf16.msra.mxu1 %v746_v2  ;;  %v409_v5 = vld [vmem:[%s353_s22] sm:$0xf]  ;;  %v748_v8 = vld [vmem:[%s390_s13 + $0x8] sm:$0xff]  ;;  %779 = vset.pattern.permute.xlu0 %v837_v14 }
  0x28   : > { %v747_v9 = vld [vmem:[%s390_s13] sm:$0xff] }
  0x29   : > { %v544_v13 = vld [vmem:[%s919_s26] sm:$0xff] }
  0x2a   : > { %437 = vmatpush.bf16.msra.mxu0 %v743_v3  ;;  %535 = vmatpush.bf16.msra.mxu2 %v749_v7  ;;  %v543_v34 = vld [vmem:[#allocation2] sm:$0xff] }
  0x2b   : > { %466 = vmatpush.bf16.msra.mxu1 %v745_v4  ;;  %547 = vperm.xlu0 %779, %v544_v13  }
  0x2d   : > { %710 = vmatmul.msk.bf16.vlgmr.msra.gmra.mxu0 %vm404_vm0, %v409_v5 }
  0x2e   : > { %719 = vmatmul.msk.bf16.vlgmr.msra.gmra.mxu1 %vm404_vm0, %v409_v5  ;;  %536 = vmatpush.bf16.msra.mxu2 %v748_v8 }
  0x32   : > { %537 = vmatpush.bf16.msra.mxu2 %v747_v9 }
  0x9d   : > { %v548_v32 = vpop.permute.xlu0 %547 }
  0xaa   : > { %v439_v10 = vpop.f32.mrf.mxu0 }
  0xab   : > { %v720_v11 = vmul.f32 -1.442695, %v439_v10  ;;  %v468_v12 = vpop.f32.mrf.mxu1 }
  0xad   : > { %780 = vpow2.f32 %v720_v11 }
  0xb2   : > { %v441_v15 = vpop.f32.mrf.mxu0 }
  0xb3   : > { %v781_v16 = vpop.eup %780  ;;  %v470_v17 = vpop.f32.mrf.mxu1 }
  0xb4   : > { %v475_v18 = vadd.f32 1.0, %v781_v16 }
  0xb6   : > { %782 = vrcp.f32 %v475_v18  ;;  %v487_v22 = vand.u32 2147483648, %v475_v18  ;;  %v485_v24 = vand.u32 2147483647, %v475_v18  ;;  %vm481_vm2 = vweird.f32 %v475_v18 }
  0xb8   : > { %v488_v26 = vor.u32 1.1754944e-38, %v487_v22  ;;  %vm486_vm4 = vcmp.eq.f32.partialorder %v485_v24, 8.507059e+37 }
  0xbc   : > { %v783_v19 = vpop.eup %782 }
  0xbd   : > { %v477_v20 = vmul.f32 %v783_v19, %v475_v18  ;;  %vm482_vm1 = vweird.f32 %v783_v19 }
  0xbe   : > { %vm483_vm3 = vmor %vm481_vm2, %vm482_vm1 }
  0xbf   : > { %v478_v21 = vsub.f32 1.0, %v477_v20 }
  0xc1   : > { %v479_v23 = vmul.f32 %v783_v19, %v478_v21 }
  0xc3   : > { %v480_v25 = vadd.f32 %v783_v19, %v479_v23 }
  0xc5   : > { %v484_v27 = vsel %vm483_vm3, %v783_v19, %v480_v25 }
  0xc6   : > { %v489_v28 = vsel %vm486_vm4, %v488_v26, %v484_v27 }
  0xc7   : > { %v491_v29 = vmul.f32 %v489_v28, %v439_v10 }
  0xc9   : > { %v492_v30 = vmul.f32 %v491_v29, %v468_v12 }
  0xcb   : > { %v493_v31 = vpack.c.bf16 %v492_v30, %v492_v30 }
  0xcd   : > { %737 = vmatmul.msk.bf16.vlgmr.msra.gmra.mxu2 %vm526_vm5, %v493_v31 }
 0x150   : > { %v539_v33 = vpop.f32.mrf.mxu2 }
 0x151   : > { %v550_v35 = vmul.f32 %v548_v32, %v539_v33 }
 0x153   : > { %v551_v36 = vadd.f32 %v550_v35, %v543_v34 }
 0x155   : > { %552 = vst.msk [vmem:[#allocation2] sm:$0xff] %vm404_vm0, %v551_v36 }
 0x158   : > { %v541_v37 = vpop.f32.mrf.mxu2 }
 0x159 PF: > { %vm558_vm6 = vcmask 257024  }
 0x15c   : > { %v556_v38 = vld [vmem:[#allocation2] sm:$0xff] }
 0x15d   : > { %v557_v39 = vpack.c.bf16 %v556_v38, %v556_v38 }
 0x15f   : > { %559 = vst.msk [vmem:[%s930_s21] sm:$0xf] %vm558_vm6, %v557_v39 }
 0x160 PF: > { %s30_s11 = sadd.s32 1, %s832_s11   ;;  %s958_s9 = smov %s828_s10 }
 0x161   : > { %p27_p11 = scmp.ge.s32.totalorder %s30_s11, 14   ;;  %s959_s10 = smov %s961_s0 }
 0x163   :  { %29 = sbr.rel (!%p27_p11) target bundleno = 9 (0x9), region = 94 }

</bundles_post_ra>
